<compile_context>
chip_gen: v7x
topology: tpu7x:2x2x1
jax: 0.10.0
libtpu: 0.0.40
codegen_flags: <defaults>
</compile_context>

<pallas_src>
import jax
import jax.numpy as jnp
from jax.experimental import pallas as pl
from jax.experimental.pallas import tpu as pltpu

_LANE = 128
_SUBLANE = 8
_DEFAULT_BATCH_TILE = 1024


def _round_up(x, m):
    return ((x + m - 1) // m) * m


def _mlp_kernel(x_ref, w1_ref, b1_ref, w2_ref, b2_ref, o_ref):
    # In-kernel f32 -> bf16 cast (free VPU work under the DMA); MXU matmul, f32 accumulate.
    x = x_ref[...].astype(jnp.bfloat16)
    h = jnp.dot(x, w1_ref[...], preferred_element_type=jnp.float32)
    h = jnp.maximum(h + b1_ref[...], 0.0)            # bias + ReLU in f32 (VPU)
    h = h.astype(jnp.bfloat16)                        # single deliberate cast for MXU LHS
    out = jnp.dot(h, w2_ref[...], preferred_element_type=jnp.float32)
    o_ref[...] = (out + b2_ref[...]).astype(o_ref.dtype)   # bf16 lane-dense store


def prepare_fmnist_params(w1, b1, w2, b2):
    """One-time parameter prep (keep OUT of the per-call path).

    w1: (hidden, in)  b1: (hidden,)   w2: (out, hidden)  b2: (out,)   -- PyTorch layout.
    Returns (in, out)-transposed, 128-lane zero-padded bf16 weights and f32 biases.
    Hidden/out are padded to exactly 128 (do not enlarge further to "fill" the MXU).
    """
    hidden, in_size = w1.shape
    out_size = w2.shape[0]
    hid_pad = _round_up(hidden, _LANE)
    out_pad = _round_up(out_size, _LANE)

    w1t = jnp.zeros((in_size, hid_pad), jnp.bfloat16).at[:, :hidden].set(
        w1.T.astype(jnp.bfloat16))
    w2t = jnp.zeros((hid_pad, out_pad), jnp.bfloat16).at[:hidden, :out_size].set(
        w2.T.astype(jnp.bfloat16))
    b1p = jnp.zeros((1, hid_pad), jnp.float32).at[0, :hidden].set(b1.astype(jnp.float32))
    b2p = jnp.zeros((1, out_pad), jnp.float32).at[0, :out_size].set(b2.astype(jnp.float32))
    return {"w1t": w1t, "b1": b1p, "w2t": w2t, "b2": b2p,
            "in_size": in_size, "out_size": out_size}


def _call_pallas(x, w1t, b1p, w2t, b2p, *, tb, out_pad, flops, bytes_accessed,
                 single_buffer_constants):
    B, in_size = x.shape
    hid_pad = w1t.shape[1]
    # Resident constants: single pipeline buffer (pl.Buffered(1)) — tiny VMEM hygiene.
    const_kw = {"pipeline_mode": pl.Buffered(1)} if single_buffer_constants else {}
    grid = (pl.cdiv(B, tb),)   # no batch padding; Pallas masks the partial edge block

    return pl.pallas_call(
        _mlp_kernel,
        out_shape=jax.ShapeDtypeStruct((B, out_pad), jnp.bfloat16),
        grid=grid,
        in_specs=[
            pl.BlockSpec((tb, in_size), lambda i: (i, 0)),               # x: batch-tiled f32
            pl.BlockSpec((in_size, hid_pad), lambda i: (0, 0), **const_kw),  # w1t resident
            pl.BlockSpec((1, hid_pad), lambda i: (0, 0), **const_kw),        # b1 resident
            pl.BlockSpec((hid_pad, out_pad), lambda i: (0, 0), **const_kw),  # w2t resident
            pl.BlockSpec((1, out_pad), lambda i: (0, 0), **const_kw),         # b2 resident
        ],
        out_specs=pl.BlockSpec((tb, out_pad), lambda i: (i, 0)),
        compiler_params=pltpu.CompilerParams(
            dimension_semantics=("parallel",)),
        cost_estimate=pl.CostEstimate(
            flops=flops, transcendentals=0, bytes_accessed=bytes_accessed),
    )(x, w1t, b1p, w2t, b2p)


def fmnist_forward(x_nchw, params, *, batch_tile=_DEFAULT_BATCH_TILE):
    """Per-call forward: flatten (view), run the fused kernel, slice the real logits."""
    w1t, b1p, w2t, b2p = params["w1t"], params["b1"], params["w2t"], params["b2"]
    in_size, out_size = params["in_size"], params["out_size"]
    hid_pad = w1t.shape[1]
    out_pad = w2t.shape[1]

    B = x_nchw.shape[0]
    x = x_nchw.reshape(B, -1)                         # x.view(x.size(0), -1); stays f32
    assert x.shape[1] == in_size

    # Batch tile: 16-row aligned (bf16 sublane packing), capped at ceil(B/2) so v7x's two
    # TensorCores each get a grid step, and never bigger than B rounded to 8 sublanes.
    tb = min(batch_tile, _round_up(pl.cdiv(B, 2), 16), _round_up(B, _SUBLANE))
    tb = max(tb, _SUBLANE)

    flops = 2 * B * (in_size * hid_pad + hid_pad * out_pad)
    bytes_accessed = int(x.size * x.dtype.itemsize          # unpadded f32 input read
                         + w1t.size * 2 + w2t.size * 2      # bf16 weights
                         + b1p.size * 4 + b2p.size * 4      # f32 biases
                         + B * out_pad * 2)                 # bf16 padded output write

    kw = dict(tb=tb, out_pad=out_pad, flops=flops, bytes_accessed=bytes_accessed)
    try:
        out = _call_pallas(x, w1t, b1p, w2t, b2p, single_buffer_constants=True, **kw)
    except Exception:
        # pipeline_mode / Buffered(1) is a tiny-VMEM hygiene optimization; fall back
        # cleanly if this jax version rejects it.
        out = _call_pallas(x, w1t, b1p, w2t, b2p, single_buffer_constants=False, **kw)

    # Padded logit lanes (out_size..127) are exact 0.0 — always slice before any
    # downstream softmax/argmax/loss.
    return out[:B, :out_size].astype(jnp.float32)


def fmnist_model_forward(x_nchw, w1, b1, w2, b2):
    """Convenience wrapper matching the original module signature (prep + forward).
    In a real training/eval loop, call prepare_fmnist_params once and reuse."""
    params = prepare_fmnist_params(w1, b1, w2, b2)
    return fmnist_forward(x_nchw, params)


def _init_linear(key, out_features, in_features):
    # Deterministic init mimicking torch.nn.Linear default: U(-1/sqrt(in), 1/sqrt(in))
    kw, kb = jax.random.split(key)
    bound = 1.0 / jnp.sqrt(jnp.float32(in_features))
    w = jax.random.uniform(kw, (out_features, in_features), jnp.float32, -bound, bound)
    b = jax.random.uniform(kb, (out_features,), jnp.float32, -bound, bound)
    return w, b


if __name__ == "__main__":
    key = jax.random.PRNGKey(0)
    k_x, k_l1, k_l2 = jax.random.split(key, 3)

    # Small shapes consistent with the module: (B, C, H, W) flattened to
    # in_size = C*H*W, 32 hidden units, 10 output classes.
    B, C, H, W = 8, 1, 16, 16          # in_size = 256
    hidden_units = 32
    out_size = 10

    x = jax.random.normal(k_x, (B, C, H, W), jnp.float32)
    w1, b1 = _init_linear(k_l1, hidden_units, C * H * W)
    w2, b2 = _init_linear(k_l2, out_size, hidden_units)

    params = prepare_fmnist_params(w1, b1, w2, b2)   # one-time prep
    logits = fmnist_forward(x, params)
    jax.block_until_ready(logits)
    assert logits.shape == (B, out_size)

    # Reference 1: original f32 semantics (loose tol; kernel uses bf16 matmuls + bf16 out).
    x_flat = x.reshape(B, -1)
    ref_f32 = jnp.maximum(x_flat @ w1.T + b1, 0.0) @ w2.T + b2
    assert jnp.allclose(logits, ref_f32, atol=1e-1, rtol=5e-2)

    # Reference 2: matched-precision reference (tight tol).
    xb = x_flat.astype(jnp.bfloat16)
    w1b = w1.T.astype(jnp.bfloat16)
    w2b = w2.T.astype(jnp.bfloat16)
    h_ref = jnp.maximum(
        jnp.dot(xb, w1b, preferred_element_type=jnp.float32) + b1, 0.0)
    ref_bf16 = (jnp.dot(h_ref.astype(jnp.bfloat16), w2b,
                        preferred_element_type=jnp.float32) + b2).astype(jnp.bfloat16)
    assert jnp.allclose(logits, ref_bf16.astype(jnp.float32), atol=2e-2, rtol=2e-2)

    print("KERNEL_OK")
</pallas_src>

<mosaic_0001>
module attributes {stable_mosaic.version = 11 : i64} {
  func.func @_mlp_kernel(%arg0: i32, %arg1: memref<8x256xf32, #tpu.memory_space<vmem>>, %arg2: memref<256x128xbf16, #tpu.memory_space<vmem>>, %arg3: memref<1x128xf32, #tpu.memory_space<vmem>>, %arg4: memref<128x128xbf16, #tpu.memory_space<vmem>>, %arg5: memref<1x128xf32, #tpu.memory_space<vmem>>, %arg6: memref<8x128xbf16, #tpu.memory_space<vmem>>) attributes {dimension_semantics = [#tpu.dimension_semantics<parallel>], iteration_bounds = array<i64: 1>, scalar_prefetch = 0 : i64, scratch_operands = 0 : i64, tpu.core_type = #tpu.core_type<tc>, window_params = [{transform_indices = @transform_0, window_bounds = array<i64: 8, 256>}, {pipeline_mode = #tpu.pipeline_mode<synchronous>, transform_indices = @transform_1, window_bounds = array<i64: 256, 128>}, {pipeline_mode = #tpu.pipeline_mode<synchronous>, transform_indices = @transform_2, window_bounds = array<i64: 1, 128>}, {pipeline_mode = #tpu.pipeline_mode<synchronous>, transform_indices = @transform_3, window_bounds = array<i64: 128, 128>}, {pipeline_mode = #tpu.pipeline_mode<synchronous>, transform_indices = @transform_4, window_bounds = array<i64: 1, 128>}, {transform_indices = @transform_5, window_bounds = array<i64: 8, 128>}]} {
    %c0 = arith.constant 0 : index
    %c0_0 = arith.constant 0 : index
    %0 = vector.load %arg1[%c0, %c0_0] : memref<8x256xf32, #tpu.memory_space<vmem>>, vector<8x256xf32>
    %1 = arith.truncf %0 : vector<8x256xf32> to vector<8x256xbf16>
    %c0_1 = arith.constant 0 : index
    %c0_2 = arith.constant 0 : index
    %2 = vector.load %arg2[%c0_1, %c0_2] : memref<256x128xbf16, #tpu.memory_space<vmem>>, vector<256x128xbf16>
    %cst = arith.constant dense<0.000000e+00> : vector<8x128xf32>
    %3 = tpu.matmul %1, %2, %cst {dimension_numbers = #tpu.dot_dimension_numbers<[1], [0], [0], [1], [0, 0, 1, 1], [], []>} : vector<8x256xbf16>, vector<256x128xbf16>, vector<8x128xf32> -> vector<8x128xf32>
    %c0_3 = arith.constant 0 : index
    %c0_4 = arith.constant 0 : index
    %4 = vector.load %arg3[%c0_3, %c0_4] : memref<1x128xf32, #tpu.memory_space<vmem>>, vector<1x128xf32>
    %5 = vector.broadcast %4 : vector<1x128xf32> to vector<8x128xf32>
    %6 = arith.addf %3, %5 : vector<8x128xf32>
    %cst_5 = arith.constant 0.000000e+00 : f32
    %7 = vector.broadcast %cst_5 : f32 to vector<8x128xf32>
    %8 = arith.maximumf %6, %7 : vector<8x128xf32>
    %9 = arith.truncf %8 : vector<8x128xf32> to vector<8x128xbf16>
    %c0_6 = arith.constant 0 : index
    %c0_7 = arith.constant 0 : index
    %10 = vector.load %arg4[%c0_6, %c0_7] : memref<128x128xbf16, #tpu.memory_space<vmem>>, vector<128x128xbf16>
    %cst_8 = arith.constant dense<0.000000e+00> : vector<8x128xf32>
    %11 = tpu.matmul %9, %10, %cst_8 {dimension_numbers = #tpu.dot_dimension_numbers<[1], [0], [0], [1], [0, 0, 1, 1], [], []>} : vector<8x128xbf16>, vector<128x128xbf16>, vector<8x128xf32> -> vector<8x128xf32>
    %c0_9 = arith.constant 0 : index
    %c0_10 = arith.constant 0 : index
    %12 = vector.load %arg5[%c0_9, %c0_10] : memref<1x128xf32, #tpu.memory_space<vmem>>, vector<1x128xf32>
    %13 = vector.broadcast %12 : vector<1x128xf32> to vector<8x128xf32>
    %14 = arith.addf %11, %13 : vector<8x128xf32>
    %15 = arith.truncf %14 : vector<8x128xf32> to vector<8x128xbf16>
    %c0_11 = arith.constant 0 : index
    %c0_12 = arith.constant 0 : index
    %16 = vector.load %arg6[%c0_11, %c0_12] : memref<8x128xbf16, #tpu.memory_space<vmem>>, vector<8x128xbf16>
    tpu.vector_store %arg6[%c0_11, %c0_12], %15 {strides = array<i32>} : memref<8x128xbf16, #tpu.memory_space<vmem>>, vector<8x128xbf16>,
    return
  }
  func.func @transform_0(%arg0: i32) -> (i32, i32) {
    %c0_i32 = arith.constant 0 : i32
    %c0_i32_0 = arith.constant 0 : i32
    return %arg0, %c0_i32 : i32, i32
  }
  func.func @transform_1(%arg0: i32) -> (i32, i32) {
    %c0_i32 = arith.constant 0 : i32
    %c0_i32_0 = arith.constant 0 : i32
    %c0_i32_1 = arith.constant 0 : i32
    return %c0_i32, %c0_i32_0 : i32, i32
  }
  func.func @transform_2(%arg0: i32) -> (i32, i32) {
    %c0_i32 = arith.constant 0 : i32
    %c0_i32_0 = arith.constant 0 : i32
    %c0_i32_1 = arith.constant 0 : i32
    return %c0_i32, %c0_i32_0 : i32, i32
  }
  func.func @transform_3(%arg0: i32) -> (i32, i32) {
    %c0_i32 = arith.constant 0 : i32
    %c0_i32_0 = arith.constant 0 : i32
    %c0_i32_1 = arith.constant 0 : i32
    return %c0_i32, %c0_i32_0 : i32, i32
  }
  func.func @transform_4(%arg0: i32) -> (i32, i32) {
    %c0_i32 = arith.constant 0 : i32
    %c0_i32_0 = arith.constant 0 : i32
    %c0_i32_1 = arith.constant 0 : i32
    return %c0_i32, %c0_i32_0 : i32, i32
  }
  func.func @transform_5(%arg0: i32) -> (i32, i32) {
    %c0_i32 = arith.constant 0 : i32
    %c0_i32_0 = arith.constant 0 : i32
    return %arg0, %c0_i32 : i32, i32
  }
}

module attributes {stable_mosaic.version = 11 : i64} {
  func.func @_mlp_kernel(%arg0: i32, %arg1: memref<8x256xf32, #tpu.memory_space<vmem>>, %arg2: memref<256x128xbf16, #tpu.memory_space<vmem>>, %arg3: memref<1x128xf32, #tpu.memory_space<vmem>>, %arg4: memref<128x128xbf16, #tpu.memory_space<vmem>>, %arg5: memref<1x128xf32, #tpu.memory_space<vmem>>, %arg6: memref<8x128xbf16, #tpu.memory_space<vmem>>) attributes {dimension_semantics = [#tpu.dimension_semantics<parallel>], iteration_bounds = array<i64: 1>, scalar_prefetch = 0 : i64, scratch_operands = 0 : i64, tpu.core_type = #tpu.core_type<tc>, window_params = [{transform_indices = @transform_0, window_bounds = array<i64: 8, 256>}, {pipeline_mode = #tpu.pipeline_mode<synchronous>, transform_indices = @transform_1, window_bounds = array<i64: 256, 128>}, {pipeline_mode = #tpu.pipeline_mode<synchronous>, transform_indices = @transform_2, window_bounds = array<i64: 1, 128>}, {pipeline_mode = #tpu.pipeline_mode<synchronous>, transform_indices = @transform_3, window_bounds = array<i64: 128, 128>}, {pipeline_mode = #tpu.pipeline_mode<synchronous>, transform_indices = @transform_4, window_bounds = array<i64: 1, 128>}, {transform_indices = @transform_5, window_bounds = array<i64: 8, 128>}]} {
    %c0 = arith.constant 0 : index
    %c0_0 = arith.constant 0 : index
    %0 = vector.load %arg1[%c0, %c0_0] : memref<8x256xf32, #tpu.memory_space<vmem>>, vector<8x256xf32>
    %1 = arith.truncf %0 : vector<8x256xf32> to vector<8x256xbf16>
    %c0_1 = arith.constant 0 : index
    %c0_2 = arith.constant 0 : index
    %2 = vector.load %arg2[%c0_1, %c0_2] : memref<256x128xbf16, #tpu.memory_space<vmem>>, vector<256x128xbf16>
    %cst = arith.constant dense<0.000000e+00> : vector<8x128xf32>
    %3 = tpu.matmul %1, %2, %cst {dimension_numbers = #tpu.dot_dimension_numbers<[1], [0], [0], [1], [0, 0, 1, 1], [], []>} : vector<8x256xbf16>, vector<256x128xbf16>, vector<8x128xf32> -> vector<8x128xf32>
    %c0_3 = arith.constant 0 : index
    %c0_4 = arith.constant 0 : index
    %4 = vector.load %arg3[%c0_3, %c0_4] : memref<1x128xf32, #tpu.memory_space<vmem>>, vector<1x128xf32>
    %5 = vector.broadcast %4 : vector<1x128xf32> to vector<8x128xf32>
    %6 = arith.addf %3, %5 : vector<8x128xf32>
    %cst_5 = arith.constant 0.000000e+00 : f32
    %7 = vector.broadcast %cst_5 : f32 to vector<8x128xf32>
    %8 = arith.maximumf %6, %7 : vector<8x128xf32>
    %9 = arith.truncf %8 : vector<8x128xf32> to vector<8x128xbf16>
    %c0_6 = arith.constant 0 : index
    %c0_7 = arith.constant 0 : index
    %10 = vector.load %arg4[%c0_6, %c0_7] : memref<128x128xbf16, #tpu.memory_space<vmem>>, vector<128x128xbf16>
    %cst_8 = arith.constant dense<0.000000e+00> : vector<8x128xf32>
    %11 = tpu.matmul %9, %10, %cst_8 {dimension_numbers = #tpu.dot_dimension_numbers<[1], [0], [0], [1], [0, 0, 1, 1], [], []>} : vector<8x128xbf16>, vector<128x128xbf16>, vector<8x128xf32> -> vector<8x128xf32>
    %c0_9 = arith.constant 0 : index
    %c0_10 = arith.constant 0 : index
    %12 = vector.load %arg5[%c0_9, %c0_10] : memref<1x128xf32, #tpu.memory_space<vmem>>, vector<1x128xf32>
    %13 = vector.broadcast %12 : vector<1x128xf32> to vector<8x128xf32>
    %14 = arith.addf %11, %13 : vector<8x128xf32>
    %15 = arith.truncf %14 : vector<8x128xf32> to vector<8x128xbf16>
    %c0_11 = arith.constant 0 : index
    %c0_12 = arith.constant 0 : index
    %16 = vector.load %arg6[%c0_11, %c0_12] : memref<8x128xbf16, #tpu.memory_space<vmem>>, vector<8x128xbf16>
    tpu.vector_store %arg6[%c0_11, %c0_12], %15 {strides = array<i32>} : memref<8x128xbf16, #tpu.memory_space<vmem>>, vector<8x128xbf16>,
    return
  }
  func.func @transform_0(%arg0: i32) -> (i32, i32) {
    %c0_i32 = arith.constant 0 : i32
    %c0_i32_0 = arith.constant 0 : i32
    return %arg0, %c0_i32 : i32, i32
  }
  func.func @transform_1(%arg0: i32) -> (i32, i32) {
    %c0_i32 = arith.constant 0 : i32
    %c0_i32_0 = arith.constant 0 : i32
    %c0_i32_1 = arith.constant 0 : i32
    return %c0_i32, %c0_i32_0 : i32, i32
  }
  func.func @transform_2(%arg0: i32) -> (i32, i32) {
    %c0_i32 = arith.constant 0 : i32
    %c0_i32_0 = arith.constant 0 : i32
    %c0_i32_1 = arith.constant 0 : i32
    return %c0_i32, %c0_i32_0 : i32, i32
  }
  func.func @transform_3(%arg0: i32) -> (i32, i32) {
    %c0_i32 = arith.constant 0 : i32
    %c0_i32_0 = arith.constant 0 : i32
    %c0_i32_1 = arith.constant 0 : i32
    return %c0_i32, %c0_i32_0 : i32, i32
  }
  func.func @transform_4(%arg0: i32) -> (i32, i32) {
    %c0_i32 = arith.constant 0 : i32
    %c0_i32_0 = arith.constant 0 : i32
    %c0_i32_1 = arith.constant 0 : i32
    return %c0_i32, %c0_i32_0 : i32, i32
  }
  func.func @transform_5(%arg0: i32) -> (i32, i32) {
    %c0_i32 = arith.constant 0 : i32
    %c0_i32_0 = arith.constant 0 : i32
    return %arg0, %c0_i32 : i32, i32
  }
}

</mosaic_0001>

<bundles_post_ra>
// kernel: tpu_custom_call.1
= control target key start
LH: loop header
LB: loop body
LE: loop exit
PB: predicated region body
PF: predicated region fallthrough
CT: control target
= control target key end

     0   :  { %10 = vsyncpa [#allocation3], 0  ;;  %s681_s0 = inlined_call_operand.hbm [shape: f32[8,256], index: 0, kind: input, shape index: {}]   ;;  %s682_s1 = inlined_call_operand.hbm [shape: bf16[256,128], index: 1, kind: input, shape index: {}]   ;;  %s683_s2 = inlined_call_operand.vmem [shape: f32[1,128], index: 2, kind: input, shape index: {}]   ;;  %s684_s3 = inlined_call_operand.hbm [shape: bf16[128,128], index: 3, kind: input, shape index: {}]   ;;  %s685_s4 = inlined_call_operand.vmem [shape: f32[1,128], index: 4, kind: input, shape index: {}]   ;;  %s686_s5 = inlined_call_operand.hbm [shape: bf16[8,128], index: 5, kind: output, shape index: {}]  }
   0x1   :  { %11 = vsyncpa [#allocation6], 0 }
   0x2   :  { %12 = vsyncpa [#allocation4], 0  ;;  %s574_s18 = smov [#allocation5]   ;;  %s480_s22 = scalar_lea.hbm %s682_s1, 2048 }
   0x3   :  { %s28_s19 = sshll.u32 %s574_s18, 4  ;;  %p481_p0 = scmp.ne.s32.totalorder %s682_s1, %s480_s22  ;;  %s29_s19 = int_to_ptr.vmem [resolvable:$true] %s28_s19 }
   0x4   :  { %p484_p1 = scmp.lt.u32.totalorder %s480_s22, %s682_s1 }
   0x6   :  { %p486_p2 = pnand %p484_p1, %p481_p0 }
   0x8   :  { %489 = shalt.err (!%p486_p2)
}
   0x9   :  { %s490_s27 = scalar_lea.vmem %s29_s19, 2048  ;;  %p495_p4 = scmp.lt.s32.totalorder %s29_s19, %s29_s19 }
   0xa   :  { %p491_p3 = scmp.ne.s32.totalorder %s29_s19, %s490_s27  ;;  %p496_p5 = scmp.lt.s32.totalorder %s490_s27, %s490_s27 }
   0xc   :  { %p497_p6 = por %p496_p5, %p495_p4 }
   0xe   :  { %p498_p7 = pnand %p497_p6, %p491_p3 }
  0x10   :  { %501 = shalt.err (!%p498_p7)
}
  0x11   :  { %s575_s28 = smov 64   ;;  %s576_s29 = smov 4  }
  0x12   :  { %34 = dma.hbm_to_vmem [thread:$0]  %s682_s1, 2048, %s29_s19, [#allocation6], %s575_s28, %s575_s28, %s576_s29  }
  0x13   :  { %s577_s7 = smov [#allocation2]   ;;  %s578_s9 = smov [#allocation7]  }
  0x14   :  { %s19_s8 = sshll.u32 %s577_s7, 4  ;;  %s42_s10 = sshll.u32 %s578_s9, 4  ;;  %s20_s8 = int_to_ptr.vmem [resolvable:$true] %s19_s8  ;;  %s43_s10 = int_to_ptr.vmem [resolvable:$true] %s42_s10 }
  0x15   :  { %s502_s13 = scalar_lea.hbm %s681_s0, 256 }
  0x16   :  { %p503_p8 = scmp.ne.s32.totalorder %s681_s0, %s502_s13  ;;  %p506_p9 = scmp.lt.u32.totalorder %s502_s13, %s681_s0 }
  0x18   :  { %p508_p10 = pnand %p506_p9, %p503_p8 }
  0x1a   :  { %511 = shalt.err (!%p508_p10)
}
  0x1b   :  { %s512_s1 = scalar_lea.vmem %s20_s8, 256  ;;  %p517_p12 = scmp.lt.s32.totalorder %s20_s8, %s20_s8 }
  0x1c   :  { %p513_p11 = scmp.ne.s32.totalorder %s20_s8, %s512_s1  ;;  %p518_p13 = scmp.lt.s32.totalorder %s512_s1, %s512_s1 }
  0x1e   :  { %p519_p0 = por %p518_p13, %p517_p12 }
  0x20   :  { %p520_p1 = pnand %p519_p0, %p513_p11 }
  0x22   :  { %523 = shalt.err (!%p520_p1)
}
  0x23   :  { %22 = dma.hbm_to_vmem [thread:$0]  %s681_s0, 256, %s20_s8, [#allocation3]  }
  0x24   :  { %s524_s22 = scalar_lea.hbm %s684_s3, 1024 }
  0x25   :  { %p525_p2 = scmp.ne.s32.totalorder %s684_s3, %s524_s22  ;;  %p528_p3 = scmp.lt.u32.totalorder %s524_s22, %s684_s3 }
  0x27   :  { %p530_p4 = pnand %p528_p3, %p525_p2 }
  0x29   :  { %533 = shalt.err (!%p530_p4)
}
  0x2a   :  { %s534_s27 = scalar_lea.vmem %s43_s10, 1024  ;;  %p539_p6 = scmp.lt.s32.totalorder %s43_s10, %s43_s10 }
  0x2b   :  { %p535_p5 = scmp.ne.s32.totalorder %s43_s10, %s534_s27  ;;  %p540_p7 = scmp.lt.s32.totalorder %s534_s27, %s534_s27 }
  0x2d   :  { %p541_p8 = por %p540_p7, %p539_p6 }
  0x2f   :  { %p542_p9 = pnand %p541_p8, %p535_p5 }
  0x31   :  { %545 = shalt.err (!%p542_p9)
}
  0x32   :  { %48 = dma.hbm_to_vmem [thread:$0]  %s684_s3, 1024, %s43_s10, [#allocation6], %s575_s28, %s575_s28, %s576_s29  }
  0x33   :  { %568 = dma.done.wait [#allocation3], 256  }
  0x34   :  { %569 = vsyncadd [#allocation3], 4294967040 }
  0x35   :  { %570 = dma.done.wait [#allocation6], 3072  }
  0x36   :  { %571 = vsyncadd [#allocation6], 4294964224  ;;  %v579_v0 = vmov 0.0   ;;  %v456_v1 = vld [vmem:[#allocation5 + $0x40] sm:$0xff]   ;;  %v458_v3 = vld [vmem:[#allocation5 + $0x48] sm:$0xff]   ;;  %vm580_vm0 = vmmov 0  }
  0x37   :  { %428 = vmatprep.subr.bf16.mxu1 %v579_v0  ;;  %v457_v2 = vld [vmem:[#allocation5] sm:$0xff]   ;;  %397 = vmatprep.subr.bf16.mxu0 %v456_v1  ;;  %v459_v4 = vld [vmem:[#allocation5 + $0x8] sm:$0xff]   ;;  %v460_v5 = vld [vmem:[#allocation5 + $0x50] sm:$0xff]   ;;  %s581_s7 = smov [#allocation8]  }
  0x38   :  { %398 = vmatpush3.bf16.msra.mxu0 %v457_v2  ;;  %v461_v6 = vld [vmem:[#allocation5 + $0x10] sm:$0xff]   ;;  %v462_v7 = vld [vmem:[#allocation5 + $0x58] sm:$0xff]   ;;  %v464_v9 = vld [vmem:[#allocation5 + $0x60] sm:$0xff]   ;;  %444 = vmatprep.mubr.msk.bf16.mxu1 %vm580_vm0, %v579_v0  ;;  %s361_s8 = sshll.u32 %s581_s7, 4  ;;  %s362_s8 = int_to_ptr.vmem [resolvable:$true] %s361_s8 }
  0x39   :  { %399 = vmatprep.subr.bf16.mxu0 %v458_v3  ;;  %v463_v8 = vld [vmem:[#allocation5 + $0x18] sm:$0xff]   ;;  %v465_v10 = vld [vmem:[#allocation5 + $0x20] sm:$0xff]   ;;  %v466_v11 = vld [vmem:[#allocation5 + $0x68] sm:$0xff]   ;;  %p551_p11 = scmp.lt.s32.totalorder %s362_s8, %s362_s8 }
  0x3a   :  { %v62_v12 = vld [vmem:[#allocation2 + $0x8] sm:$0xff]  ;;  %v472_v14 = vld [vmem:[#allocation7] sm:$0xff]   ;;  %v467_v15 = vld [vmem:[#allocation5 + $0x28] sm:$0xff]  }
  0x3b   :  { %v64_v13 = vpack.c.bf16 %v62_v12, %v62_v12  ;;  %v468_v16 = vld [vmem:[#allocation5 + $0x70] sm:$0xff]   ;;  %429 = vmatpush3.bf16.msra.mxu1 %v472_v14  ;;  %v473_v17 = vld [vmem:[#allocation7 + $0x8] sm:$0xff]   ;;  %v470_v19 = vld [vmem:[#allocation5 + $0x78] sm:$0xff]  }
  0x3c   :  { %400 = vmatpush3.bf16.msra.mxu0 %v459_v4  ;;  %430 = vmatprep.subr.bf16.mxu1 %v579_v0  ;;  %v469_v18 = vld [vmem:[#allocation5 + $0x30] sm:$0xff]   ;;  %v471_v21 = vld [vmem:[#allocation5 + $0x38] sm:$0xff]   ;;  %v476_v25 = vld [vmem:[#allocation7 + $0x20] sm:$0xff]  }
  0x3d   :  { %401 = vmatprep.subr.bf16.mxu0 %v460_v5  ;;  %232 = vmatprep.mubr.bf16.mxu0 %v64_v13  ;;  %v474_v20 = vld [vmem:[#allocation7 + $0x10] sm:$0xff]   ;;  %v475_v23 = vld [vmem:[#allocation7 + $0x18] sm:$0xff]   ;;  %v477_v26 = vld [vmem:[#allocation7 + $0x28] sm:$0xff]  }
  0x3e   :  { %v61_v22 = vld [vmem:[#allocation2] sm:$0xff]  ;;  %v479_v28 = vld [vmem:[#allocation7 + $0x38] sm:$0xff]  }
  0x3f   :  { %431 = vmatpush3.bf16.msra.mxu1 %v473_v17  ;;  %v63_v24 = vpack.c.bf16 %v61_v22, %v61_v22  ;;  %v478_v27 = vld [vmem:[#allocation7 + $0x30] sm:$0xff]  }
  0x40   :  { %402 = vmatpush3.bf16.msra.mxu0 %v461_v6  ;;  %432 = vmatprep.subr.bf16.mxu1 %v579_v0  ;;  %v371_v30 = vld [vmem:[%s683_s2] ss:$0 sm:$0xff]  ;;  %s546_s2 = scalar_lea.vmem %s362_s8, 64 }
  0x41   :  { %403 = vmatprep.subr.bf16.mxu0 %v462_v7  ;;  %v388_v38 = vld [vmem:[%s685_s4] ss:$0 sm:$0xff]  ;;  %p547_p10 = scmp.ne.s32.totalorder %s362_s8, %s546_s2  ;;  %p552_p12 = scmp.lt.s32.totalorder %s546_s2, %s546_s2 }
  0x43   :  { %433 = vmatpush3.bf16.msra.mxu1 %v474_v20  ;;  %p553_p13 = por %p552_p12, %p551_p11 }
  0x44   :  { %404 = vmatpush3.bf16.msra.mxu0 %v463_v8  ;;  %434 = vmatprep.subr.bf16.mxu1 %v579_v0 }
  0x45   :  { %405 = vmatprep.subr.bf16.mxu0 %v464_v9  ;;  %p554_p0 = pnand %p553_p13, %p547_p10 }
  0x47   :  { %435 = vmatpush3.bf16.msra.mxu1 %v475_v23 }
  0x48   :  { %406 = vmatpush3.bf16.msra.mxu0 %v465_v10  ;;  %436 = vmatprep.subr.bf16.mxu1 %v579_v0 }
  0x49   :  { %407 = vmatprep.subr.bf16.mxu0 %v466_v11 }
  0x4b   :  { %437 = vmatpush3.bf16.msra.mxu1 %v476_v25 }
  0x4c   :  { %408 = vmatpush3.bf16.msra.mxu0 %v467_v15  ;;  %438 = vmatprep.subr.bf16.mxu1 %v579_v0 }
  0x4d   :  { %409 = vmatprep.subr.bf16.mxu0 %v468_v16 }
  0x4f   :  { %439 = vmatpush3.bf16.msra.mxu1 %v477_v26 }
  0x50   :  { %410 = vmatpush3.bf16.msra.mxu0 %v469_v18  ;;  %440 = vmatprep.subr.bf16.mxu1 %v579_v0 }
  0x51   :  { %411 = vmatprep.subr.bf16.mxu0 %v470_v19 }
  0x53   :  { %441 = vmatpush3.bf16.msra.mxu1 %v478_v27 }
  0x54   :  { %412 = vmatpush3.bf16.msra.mxu0 %v471_v21  ;;  %442 = vmatprep.subr.bf16.mxu1 %v579_v0 }
  0x57   :  { %233 = vmatmul.mubr.bf16.vlgmr.msra.gmra.mrb[0].mxu0 %v63_v24  ;;  %443 = vmatpush3.bf16.msra.mxu1 %v479_v28 }
 0x12a   :  { %v413_v29 = vpop.f32.mrb[0].mxu0 }
 0x12b   :  { %v414_v31 = vpop.f32.mrb[1].mxu0 }
 0x12c   :  { %v415_v32 = vadd.f32 %v414_v31, %v413_v29  ;;  %v416_v33 = vpop.f32.mrb[2].mxu0 }
 0x12d   :  { %v417_v34 = vpop.f32.mrb[3].mxu0 }
 0x12e   :  { %v235_v35 = vadd.f32 %v415_v32, %v371_v30 }
 0x130   :  { %v240_v36 = vmax.f32 %v235_v35, 0.0 }
 0x132   :  { %v241_v37 = vpack.c.bf16 %v240_v36, %v240_v36 }
 0x134   :  { %445 = vmatmul.mubr.bf16.vlgmr.msra.gmra.mrb[0].mxu1 %v241_v37 }
 0x207   :  { %v347_v39 = vpop.f32.mrb[0].mxu1 }
 0x208   :  { %v348_v40 = vadd.f32 %v388_v38, %v347_v39  ;;  %v446_v41 = vpop.f32.mrb[1].mxu1 }
 0x209   :  { %v350_v42 = vpop.f32.mrb[2].mxu1 }
 0x20a   :  { %v353_v43 = vpack.c.bf16 %v348_v40, %v348_v40  ;;  %v447_v44 = vpop.f32.mrb[3].mxu1 }
 0x20c   :  { %354 = vst [vmem:[#allocation8] sm:$0xf] %v353_v43 }
 0x20d   :  { %557 = shalt.err (!%p554_p0)
}
 0x20e   :  { %s558_s4 = scalar_lea.hbm %s686_s5, 64 }
 0x20f   :  { %p559_p1 = scmp.ne.s32.totalorder %s686_s5, %s558_s4  ;;  %p562_p2 = scmp.lt.u32.totalorder %s558_s4, %s686_s5 }
 0x211   :  { %p564_p3 = pnand %p562_p2, %p559_p1 }
 0x213   :  { %567 = shalt.err (!%p564_p3)
}
 0x214   :  { %364 = dma.vmem_to_hbm [thread:$0]  %s362_s8, 64, %s686_s5, [#allocation4]  }
 0x215   :  { %572 = dma.done.wait [#allocation4], 64  }
 0x216   :  { %573 = vsyncadd [#allocation4], 4294967232 }
 0x217   :  { %368 = vsyncpa [#allocation3], 1 }
 0x218   :  { %369 = vsyncpa [#allocation6], 1 }
 0x219   :  { %370 = vsyncpa [#allocation4], 1 }

// kernel: tpu_custom_call.1
= control target key start
LH: loop header
LB: loop body
LE: loop exit
PB: predicated region body
PF: predicated region fallthrough
CT: control target
= control target key end

     0   :  { %10 = vsyncpa [#allocation3], 0  ;;  %s681_s0 = inlined_call_operand.hbm [shape: f32[8,256], index: 0, kind: input, shape index: {}]   ;;  %s682_s1 = inlined_call_operand.hbm [shape: bf16[256,128], index: 1, kind: input, shape index: {}]   ;;  %s683_s2 = inlined_call_operand.vmem [shape: f32[1,128], index: 2, kind: input, shape index: {}]   ;;  %s684_s3 = inlined_call_operand.hbm [shape: bf16[128,128], index: 3, kind: input, shape index: {}]   ;;  %s685_s4 = inlined_call_operand.vmem [shape: f32[1,128], index: 4, kind: input, shape index: {}]   ;;  %s686_s5 = inlined_call_operand.hbm [shape: bf16[8,128], index: 5, kind: output, shape index: {}]  }
   0x1   :  { %11 = vsyncpa [#allocation6], 0 }
   0x2   :  { %12 = vsyncpa [#allocation4], 0  ;;  %s574_s18 = smov [#allocation5]   ;;  %s480_s22 = scalar_lea.hbm %s682_s1, 2048 }
   0x3   :  { %s28_s19 = sshll.u32 %s574_s18, 4  ;;  %p481_p0 = scmp.ne.s32.totalorder %s682_s1, %s480_s22  ;;  %s29_s19 = int_to_ptr.vmem [resolvable:$true] %s28_s19 }
   0x4   :  { %p484_p1 = scmp.lt.u32.totalorder %s480_s22, %s682_s1 }
   0x6   :  { %p486_p2 = pnand %p484_p1, %p481_p0 }
   0x8   :  { %489 = shalt.err (!%p486_p2)
}
   0x9   :  { %s490_s27 = scalar_lea.vmem %s29_s19, 2048  ;;  %p495_p4 = scmp.lt.s32.totalorder %s29_s19, %s29_s19 }
   0xa   :  { %p491_p3 = scmp.ne.s32.totalorder %s29_s19, %s490_s27  ;;  %p496_p5 = scmp.lt.s32.totalorder %s490_s27, %s490_s27 }
   0xc   :  { %p497_p6 = por %p496_p5, %p495_p4 }
   0xe   :  { %p498_p7 = pnand %p497_p6, %p491_p3 }
  0x10   :  { %501 = shalt.err (!%p498_p7)
}
  0x11   :  { %s575_s28 = smov 64   ;;  %s576_s29 = smov 4  }
  0x12   :  { %34 = dma.hbm_to_vmem [thread:$0]  %s682_s1, 2048, %s29_s19, [#allocation6], %s575_s28, %s575_s28, %s576_s29  }
  0x13   :  { %s577_s7 = smov [#allocation2]   ;;  %s578_s9 = smov [#allocation7]  }
  0x14   :  { %s19_s8 = sshll.u32 %s577_s7, 4  ;;  %s42_s10 = sshll.u32 %s578_s9, 4  ;;  %s20_s8 = int_to_ptr.vmem [resolvable:$true] %s19_s8  ;;  %s43_s10 = int_to_ptr.vmem [resolvable:$true] %s42_s10 }
  0x15   :  { %s502_s13 = scalar_lea.hbm %s681_s0, 256 }
  0x16   :  { %p503_p8 = scmp.ne.s32.totalorder %s681_s0, %s502_s13  ;;  %p506_p9 = scmp.lt.u32.totalorder %s502_s13, %s681_s0 }
  0x18   :  { %p508_p10 = pnand %p506_p9, %p503_p8 }
  0x1a   :  { %511 = shalt.err (!%p508_p10)
}
  0x1b   :  { %s512_s1 = scalar_lea.vmem %s20_s8, 256  ;;  %p517_p12 = scmp.lt.s32.totalorder %s20_s8, %s20_s8 }
  0x1c   :  { %p513_p11 = scmp.ne.s32.totalorder %s20_s8, %s512_s1  ;;  %p518_p13 = scmp.lt.s32.totalorder %s512_s1, %s512_s1 }
  0x1e   :  { %p519_p0 = por %p518_p13, %p517_p12 }
  0x20   :  { %p520_p1 = pnand %p519_p0, %p513_p11 }
  0x22   :  { %523 = shalt.err (!%p520_p1)
}
  0x23   :  { %22 = dma.hbm_to_vmem [thread:$0]  %s681_s0, 256, %s20_s8, [#allocation3]  }
  0x24   :  { %s524_s22 = scalar_lea.hbm %s684_s3, 1024 }
  0x25   :  { %p525_p2 = scmp.ne.s32.totalorder %s684_s3, %s524_s22  ;;  %p528_p3 = scmp.lt.u32.totalorder %s524_s22, %s684_s3 }
  0x27   :  { %p530_p4 = pnand %p528_p3, %p525_p2 }
  0x29   :  { %533 = shalt.err (!%p530_p4)
}
  0x2a   :  { %s534_s27 = scalar_lea.vmem %s43_s10, 1024  ;;  %p539_p6 = scmp.lt.s32.totalorder %s43_s10, %s43_s10 }
  0x2b   :  { %p535_p5 = scmp.ne.s32.totalorder %s43_s10, %s534_s27  ;;  %p540_p7 = scmp.lt.s32.totalorder %s534_s27, %s534_s27 }
  0x2d   :  { %p541_p8 = por %p540_p7, %p539_p6 }
  0x2f   :  { %p542_p9 = pnand %p541_p8, %p535_p5 }
  0x31   :  { %545 = shalt.err (!%p542_p9)
}
  0x32   :  { %48 = dma.hbm_to_vmem [thread:$0]  %s684_s3, 1024, %s43_s10, [#allocation6], %s575_s28, %s575_s28, %s576_s29  }
  0x33   :  { %568 = dma.done.wait [#allocation3], 256  }
  0x34   :  { %569 = vsyncadd [#allocation3], 4294967040 }
  0x35   :  { %570 = dma.done.wait [#allocation6], 3072  }
  0x36   :  { %571 = vsyncadd [#allocation6], 4294964224  ;;  %v579_v0 = vmov 0.0   ;;  %v456_v1 = vld [vmem:[#allocation5 + $0x40] sm:$0xff]   ;;  %v458_v3 = vld [vmem:[#allocation5 + $0x48] sm:$0xff]   ;;  %vm580_vm0 = vmmov 0  }
  0x37   :  { %428 = vmatprep.subr.bf16.mxu1 %v579_v0  ;;  %v457_v2 = vld [vmem:[#allocation5] sm:$0xff]   ;;  %397 = vmatprep.subr.bf16.mxu0 %v456_v1  ;;  %v459_v4 = vld [vmem:[#allocation5 + $0x8] sm:$0xff]   ;;  %v460_v5 = vld [vmem:[#allocation5 + $0x50] sm:$0xff]   ;;  %s581_s7 = smov [#allocation8]  }
  0x38   :  { %398 = vmatpush3.bf16.msra.mxu0 %v457_v2  ;;  %v461_v6 = vld [vmem:[#allocation5 + $0x10] sm:$0xff]   ;;  %v462_v7 = vld [vmem:[#allocation5 + $0x58] sm:$0xff]   ;;  %v464_v9 = vld [vmem:[#allocation5 + $0x60] sm:$0xff]   ;;  %444 = vmatprep.mubr.msk.bf16.mxu1 %vm580_vm0, %v579_v0  ;;  %s361_s8 = sshll.u32 %s581_s7, 4  ;;  %s362_s8 = int_to_ptr.vmem [resolvable:$true] %s361_s8 }
  0x39   :  { %399 = vmatprep.subr.bf16.mxu0 %v458_v3  ;;  %v463_v8 = vld [vmem:[#allocation5 + $0x18] sm:$0xff]   ;;  %v465_v10 = vld [vmem:[#allocation5 + $0x20] sm:$0xff]   ;;  %v466_v11 = vld [vmem:[#allocation5 + $0x68] sm:$0xff]   ;;  %p551_p11 = scmp.lt.s32.totalorder %s362_s8, %s362_s8 }
  0x3a   :  { %v62_v12 = vld [vmem:[#allocation2 + $0x8] sm:$0xff]  ;;  %v472_v14 = vld [vmem:[#allocation7] sm:$0xff]   ;;  %v467_v15 = vld [vmem:[#allocation5 + $0x28] sm:$0xff]  }
  0x3b   :  { %v64_v13 = vpack.c.bf16 %v62_v12, %v62_v12  ;;  %v468_v16 = vld [vmem:[#allocation5 + $0x70] sm:$0xff]   ;;  %429 = vmatpush3.bf16.msra.mxu1 %v472_v14  ;;  %v473_v17 = vld [vmem:[#allocation7 + $0x8] sm:$0xff]   ;;  %v470_v19 = vld [vmem:[#allocation5 + $0x78] sm:$0xff]  }
  0x3c   :  { %400 = vmatpush3.bf16.msra.mxu0 %v459_v4  ;;  %430 = vmatprep.subr.bf16.mxu1 %v579_v0  ;;  %v469_v18 = vld [vmem:[#allocation5 + $0x30] sm:$0xff]   ;;  %v471_v21 = vld [vmem:[#allocation5 + $0x38] sm:$0xff]   ;;  %v476_v25 = vld [vmem:[#allocation7 + $0x20] sm:$0xff]  }
  0x3d   :  { %401 = vmatprep.subr.bf16.mxu0 %v460_v5  ;;  %232 = vmatprep.mubr.bf16.mxu0 %v64_v13  ;;  %v474_v20 = vld [vmem:[#allocation7 + $0x10] sm:$0xff]   ;;  %v475_v23 = vld [vmem:[#allocation7 + $0x18] sm:$0xff]   ;;  %v477_v26 = vld [vmem:[#allocation7 + $0x28] sm:$0xff]  }
  0x3e   :  { %v61_v22 = vld [vmem:[#allocation2] sm:$0xff]  ;;  %v479_v28 = vld [vmem:[#allocation7 + $0x38] sm:$0xff]  }
  0x3f   :  { %431 = vmatpush3.bf16.msra.mxu1 %v473_v17  ;;  %v63_v24 = vpack.c.bf16 %v61_v22, %v61_v22  ;;  %v478_v27 = vld [vmem:[#allocation7 + $0x30] sm:$0xff]  }
  0x40   :  { %402 = vmatpush3.bf16.msra.mxu0 %v461_v6  ;;  %432 = vmatprep.subr.bf16.mxu1 %v579_v0  ;;  %v371_v30 = vld [vmem:[%s683_s2] ss:$0 sm:$0xff]  ;;  %s546_s2 = scalar_lea.vmem %s362_s8, 64 }
  0x41   :  { %403 = vmatprep.subr.bf16.mxu0 %v462_v7  ;;  %v388_v38 = vld [vmem:[%s685_s4] ss:$0 sm:$0xff]  ;;  %p547_p10 = scmp.ne.s32.totalorder %s362_s8, %s546_s2  ;;  %p552_p12 = scmp.lt.s32.totalorder %s546_s2, %s546_s2 }
  0x43   :  { %433 = vmatpush3.bf16.msra.mxu1 %v474_v20  ;;  %p553_p13 = por %p552_p12, %p551_p11 }
  0x44   :  { %404 = vmatpush3.bf16.msra.mxu0 %v463_v8  ;;  %434 = vmatprep.subr.bf16.mxu1 %v579_v0 }
  0x45   :  { %405 = vmatprep.subr.bf16.mxu0 %v464_v9  ;;  %p554_p0 = pnand %p553_p13, %p547_p10 }
  0x47   :  { %435 = vmatpush3.bf16.msra.mxu1 %v475_v23 }
  0x48   :  { %406 = vmatpush3.bf16.msra.mxu0 %v465_v10  ;;  %436 = vmatprep.subr.bf16.mxu1 %v579_v0 }
  0x49   :  { %407 = vmatprep.subr.bf16.mxu0 %v466_v11 }
  0x4b   :  { %437 = vmatpush3.bf16.msra.mxu1 %v476_v25 }
  0x4c   :  { %408 = vmatpush3.bf16.msra.mxu0 %v467_v15  ;;  %438 = vmatprep.subr.bf16.mxu1 %v579_v0 }
  0x4d   :  { %409 = vmatprep.subr.bf16.mxu0 %v468_v16 }
  0x4f   :  { %439 = vmatpush3.bf16.msra.mxu1 %v477_v26 }
  0x50   :  { %410 = vmatpush3.bf16.msra.mxu0 %v469_v18  ;;  %440 = vmatprep.subr.bf16.mxu1 %v579_v0 }
  0x51   :  { %411 = vmatprep.subr.bf16.mxu0 %v470_v19 }
  0x53   :  { %441 = vmatpush3.bf16.msra.mxu1 %v478_v27 }
  0x54   :  { %412 = vmatpush3.bf16.msra.mxu0 %v471_v21  ;;  %442 = vmatprep.subr.bf16.mxu1 %v579_v0 }
  0x57   :  { %233 = vmatmul.mubr.bf16.vlgmr.msra.gmra.mrb[0].mxu0 %v63_v24  ;;  %443 = vmatpush3.bf16.msra.mxu1 %v479_v28 }
 0x12a   :  { %v413_v29 = vpop.f32.mrb[0].mxu0 }
 0x12b   :  { %v414_v31 = vpop.f32.mrb[1].mxu0 }
 0x12c   :  { %v415_v32 = vadd.f32 %v414_v31, %v413_v29  ;;  %v416_v33 = vpop.f32.mrb[2].mxu0 }
 0x12d   :  { %v417_v34 = vpop.f32.mrb[3].mxu0 }
 0x12e   :  { %v235_v35 = vadd.f32 %v415_v32, %v371_v30 }
 0x130   :  { %v240_v36 = vmax.f32 %v235_v35, 0.0 }
 0x132   :  { %v241_v37 = vpack.c.bf16 %v240_v36, %v240_v36 }
 0x134   :  { %445 = vmatmul.mubr.bf16.vlgmr.msra.gmra.mrb[0].mxu1 %v241_v37 }
 0x207   :  { %v347_v39 = vpop.f32.mrb[0].mxu1 }
 0x208   :  { %v348_v40 = vadd.f32 %v388_v38, %v347_v39  ;;  %v446_v41 = vpop.f32.mrb[1].mxu1 }
 0x209   :  { %v350_v42 = vpop.f32.mrb[2].mxu1 }
 0x20a   :  { %v353_v43 = vpack.c.bf16 %v348_v40, %v348_v40  ;;  %v447_v44 = vpop.f32.mrb[3].mxu1 }
 0x20c   :  { %354 = vst [vmem:[#allocation8] sm:$0xf] %v353_v43 }
 0x20d   :  { %557 = shalt.err (!%p554_p0)
}
 0x20e   :  { %s558_s4 = scalar_lea.hbm %s686_s5, 64 }
 0x20f   :  { %p559_p1 = scmp.ne.s32.totalorder %s686_s5, %s558_s4  ;;  %p562_p2 = scmp.lt.u32.totalorder %s558_s4, %s686_s5 }
 0x211   :  { %p564_p3 = pnand %p562_p2, %p559_p1 }
 0x213   :  { %567 = shalt.err (!%p564_p3)
}
 0x214   :  { %364 = dma.vmem_to_hbm [thread:$0]  %s362_s8, 64, %s686_s5, [#allocation4]  }
 0x215   :  { %572 = dma.done.wait [#allocation4], 64  }
 0x216   :  { %573 = vsyncadd [#allocation4], 4294967232 }
 0x217   :  { %368 = vsyncpa [#allocation3], 1 }
 0x218   :  { %369 = vsyncpa [#allocation6], 1 }
 0x219   :  { %370 = vsyncpa [#allocation4], 1 }

</bundles_post_ra>
